<compile_context>
chip_gen: v6e
topology: v6e:2x2x1
jax: 0.10.0
libtpu: 0.0.40
codegen_flags: <defaults>
</compile_context>

<pallas_src>
import math
from functools import partial

import jax
import jax.numpy as jnp
from jax.experimental import pallas as pl
from jax.experimental.pallas import tpu as pltpu

EPS = 1e-5
KSIZE = 3


def _make_upblock_kernel(n_batch, cin, cout, wpad, lover, inv_m):
    """Fused conv-transpose(3x3, stride=(2,1)) + training-BN + ReLU kernel."""

    def kernel(x_ref, w_ref, mask_ref, gamma_ref, beta_ref, o_ref, rhs_ref):
        # x_ref:     (N, Cin, Lin)      f32  padded input, rows flattened with width Wpad
        # w_ref:     (2*Cout, 6*Cin)    f32  [even rows | odd rows] x [s0 taps | s1 taps]
        # mask_ref:  (1, N*Lover)       f32  1.0 where the oversized column is a real output column
        # gamma/beta:(Cout, 1)          f32
        # o_ref:     (2*Cout, N*Lover)  f32  rows = (parity, cout); lanes = (n, q*Wpad + c)
        # rhs_ref:   (6*Cin, N*Lover)   f32  VMEM scratch: stacked shifted input slices
        nl_per_n = lover  # per-batch lane block (multiple of 128 -> aligned stores)

        # Fused im2col: stack the 6 distinct shifted slices along the contraction
        # (sublane) axis and the batch along the lane axis.  Contraction order is
        # tap-major, cin-minor, matching the wrapper's LHS packing.
        for n in range(n_batch):
            xn = x_ref[n]  # (Cin, Lin)
            for t in range(3):
                lo = n * nl_per_n
                rhs_ref[t * cin:(t + 1) * cin, lo:lo + lover] = xn[:, t:t + lover]
                rhs_ref[(3 + t) * cin:(4 + t) * cin, lo:lo + lover] = \
                    xn[:, wpad + t:wpad + t + lover]

        # ONE MXU matmul for all taps, both row parities and the whole batch.
        y = jnp.dot(w_ref[...], rhs_ref[...],
                    preferred_element_type=jnp.float32)          # (2*Cout, N*Lover)

        # Single-pass training-mode BatchNorm statistics over valid columns.
        mask = mask_ref[...]                                      # (1, N*Lover)
        ym = y * mask
        s1 = jnp.sum(ym, axis=1, keepdims=True)                   # (2*Cout, 1)
        s2 = jnp.sum(ym * y, axis=1, keepdims=True)               # (2*Cout, 1)
        s1 = s1[:cout] + s1[cout:]                                # combine parities -> (Cout, 1)
        s2 = s2[:cout] + s2[cout:]
        mean = s1 * inv_m
        var = jnp.maximum(s2 * inv_m - mean * mean, 0.0)          # guard E[x^2]-E[x]^2 cancellation

        scale = gamma_ref[...] * jax.lax.rsqrt(var + EPS)         # fold gamma * inv_std
        shift = beta_ref[...] - mean * scale
        scale2 = jnp.concatenate([scale, scale], axis=0)          # (2*Cout, 1) per-row scale
        shift2 = jnp.concatenate([shift, shift], axis=0)

        # Normalize + ReLU, single unmasked lane-dense store.
        o_ref[...] = jnp.maximum(y * scale2 + shift2, 0.0)

    return kernel


@partial(jax.jit, static_argnames=("stride", "padding", "out_padding"))
def upblock_forward(x, weight, bias, gamma, beta,
                    stride=(2, 1), padding=(1, 0), out_padding=(1, 0)):
    N, Cin, H, W = x.shape
    Cout = weight.shape[1]
    sh, sw = stride
    ph, pw = padding
    oph, opw = out_padding
    if (KSIZE, sh, sw, ph, pw, oph, opw) != (3, 2, 1, 1, 0, 1, 0):
        raise NotImplementedError(
            "optimized parity-split path is specialized to the module's config: "
            "kernel=3x3, stride=(2,1), padding=(1,0), output_padding=(1,0)")
    # TODO(synk): generic stride/padding fallback path if other configs are ever needed.

    Hout, Wout = 2 * H, W + 2

    # Minimum padded width = W + 4 (2-column halo each side); round up so
    # Lover = H*Wpad is a multiple of 128 when cheap -> unmasked stores and
    # vreg-aligned per-batch lane blocks (24 for H=16, W=16 -> Lover=384).
    wpad_min = W + 4
    step = 128 // math.gcd(H, 128)
    Wpad = -(-wpad_min // step) * step
    if Wpad - wpad_min > 32:          # awkward H: don't blow up the halo
        Wpad = wpad_min
    Lover = H * Wpad                  # flattened output length per (batch, parity)
    Lin = (H + 2) * Wpad              # +2 zero rows: bottom tap of last odd row + flat-shift slack
    NL = N * Lover

    # ---- input: pad rows/cols, flatten spatial.  No zero-upsampled array is built. ----
    xpad = jnp.pad(x, ((0, 0), (0, 0), (0, 2), (2, Wpad - W - 2)))
    x_flat = xpad.reshape(N, Cin, Lin).astype(jnp.float32)

    # ---- weights: ConvTranspose2d weight (Cin, Cout, kh, kw) -> flipped direct-conv
    #      kernel, repacked into one (2*Cout, 6*Cin) LHS (tap-major, cin-minor along the
    #      contraction, matching the in-kernel RHS stacking).  Even output rows use kernel
    #      row 1 only; odd output rows use kernel row 0 (same input row) and row 2 (next row).
    wd = jnp.transpose(weight[:, :, ::-1, ::-1], (1, 0, 2, 3))        # (Cout, Cin, 3, 3)

    def taps(row):
        return jnp.transpose(wd[:, :, row, :], (0, 2, 1)).reshape(Cout, 3 * Cin)

    zeros = jnp.zeros((Cout, 3 * Cin), jnp.float32)
    w_even = jnp.concatenate([taps(1), zeros], axis=1)                # (Cout, 6*Cin)
    w_odd = jnp.concatenate([taps(0), taps(2)], axis=1)               # (Cout, 6*Cin)
    w_lhs = jnp.concatenate([w_even, w_odd], axis=0).astype(jnp.float32)  # (2*Cout, 6*Cin)
    # TODO(synk): when weights are reused across many steps, precompute w_lhs (and mask)
    # once outside the per-call path instead of rebuilding them every call.

    # ---- BatchNorm valid-column mask over the oversized flattened lane axis ----
    mask = ((jnp.arange(NL, dtype=jnp.int32) % Wpad) < Wout)
    mask = mask.astype(jnp.float32).reshape(1, NL)

    # ConvTranspose2d bias is a per-channel constant added before training-mode BatchNorm;
    # it cancels exactly in the mean subtraction, so it never enters the kernel.
    del bias

    inv_m = 1.0 / float(N * Hout * Wout)
    kernel = _make_upblock_kernel(N, Cin, Cout, Wpad, Lover, inv_m)

    # Whole problem (~tens of KiB) fits in VMEM -> one fused invocation.
    # TODO(synk): for large N*Hout*Wout, tile the flattened axis across a grid (two-pass BN
    # with per-channel partial sums in VMEM scratch over an "arbitrary" axis, independent
    # axis marked "parallel" for megacore) and size tiles for v7x's 64 MiB physical /
    # 32 MiB default-scoped VMEM.
    out = pl.pallas_call(
        kernel,
        out_shape=jax.ShapeDtypeStruct((2 * Cout, NL), jnp.float32),
        grid=(1,),
        in_specs=[
            pl.BlockSpec((N, Cin, Lin), lambda i: (0, 0, 0)),
            pl.BlockSpec((2 * Cout, 6 * Cin), lambda i: (0, 0)),
            pl.BlockSpec((1, NL), lambda i: (0, 0)),
            pl.BlockSpec((Cout, 1), lambda i: (0, 0)),
            pl.BlockSpec((Cout, 1), lambda i: (0, 0)),
        ],
        out_specs=pl.BlockSpec((2 * Cout, NL), lambda i: (0, 0)),
        scratch_shapes=[pltpu.VMEM((6 * Cin, NL), jnp.float32)],
        compiler_params=pltpu.CompilerParams(dimension_semantics=("arbitrary",)),
    )(x_flat, w_lhs, mask,
      gamma.reshape(Cout, 1).astype(jnp.float32),
      beta.reshape(Cout, 1).astype(jnp.float32))

    # ---- (2*Cout, N*Lover) -> NCHW: drop halo columns, interleave row parities.
    #      Runs under the same jit, so it fuses into one small copy (no extra HBM round trip
    #      of separate reshape/slice/transpose launches). ----
    out = out.reshape(2, Cout, N, H, Wpad)[..., :Wout]     # (2, Cout, N, H, Wout)
    out = jnp.transpose(out, (2, 1, 3, 0, 4))              # (N, Cout, H, 2, Wout)
    return out.reshape(N, Cout, Hout, Wout)


def upblock_reference(x, weight, bias, gamma, beta,
                      stride=(2, 1), padding=(1, 0), out_padding=(1, 0)):
    """Pure-JAX f32 reference (standard conv-transpose -> direct conv equivalence)."""
    N, Cin, H, W = x.shape
    sh, sw = stride
    ph, pw = padding
    oph, opw = out_padding
    k = KSIZE
    Hu, Wu = (H - 1) * sh + 1, (W - 1) * sw + 1
    xu = jnp.zeros((N, Cin, Hu, Wu), x.dtype).at[:, :, ::sh, ::sw].set(x)
    pt, pb = k - 1 - ph, k - 1 - ph + oph
    pl_, pr = k - 1 - pw, k - 1 - pw + opw
    xp = jnp.pad(xu, ((0, 0), (0, 0), (pt, pb), (pl_, pr)))
    Hp, Wp = xp.shape[2], xp.shape[3]
    Hout, Wout = Hp - k + 1, Wp - k + 1
    wd = jnp.transpose(weight[:, :, ::-1, ::-1], (1, 0, 2, 3))   # (Cout, Cin, k, k)
    Cout = wd.shape[0]
    y = jnp.zeros((N, Cout, Hout, Wout), jnp.float32)
    for i in range(k):
        for j in range(k):
            y = y + jnp.einsum('nchw,dc->ndhw',
                               xp[:, :, i:i + Hout, j:j + Wout], wd[:, :, i, j],
                               precision=jax.lax.Precision.HIGHEST)
    y = y + bias.reshape(1, -1, 1, 1)
    mean = jnp.mean(y, axis=(0, 2, 3), keepdims=True)
    var = jnp.mean((y - mean) ** 2, axis=(0, 2, 3), keepdims=True)
    yn = (y - mean) * jax.lax.rsqrt(var + EPS) * gamma.reshape(1, -1, 1, 1) \
        + beta.reshape(1, -1, 1, 1)
    return jnp.maximum(yn, 0.0)


if __name__ == "__main__":
    key = jax.random.PRNGKey(0)
    k1, k2, k3, k4, k5 = jax.random.split(key, 5)

    # Small shapes consistent with the module: batch=2, in=4, out=8, 16x16 spatial.
    N, Cin, H, W = 2, 4, 16, 16
    Cout = 8
    stride = (2, 1)              # output_padding=(1,0) requires stride_h >= 2

    x = jax.random.normal(k1, (N, Cin, H, W), jnp.float32)
    # nn.ConvTranspose2d weight shape: (in_channels, out_channels, kH, kW)
    weight = 0.1 * jax.random.normal(k2, (Cin, Cout, KSIZE, KSIZE), jnp.float32)
    bias = 0.1 * jax.random.normal(k3, (Cout,), jnp.float32)
    gamma = 1.0 + 0.1 * jax.random.normal(k4, (Cout,), jnp.float32)
    beta = 0.1 * jax.random.normal(k5, (Cout,), jnp.float32)

    y = upblock_forward(x, weight, bias, gamma, beta, stride=stride)
    y = jax.block_until_ready(y)

    # Shape / ReLU sanity.
    assert y.shape == (N, Cout, 2 * H, W + 2), y.shape
    assert bool(jnp.all(y >= 0.0))

    # Numerical check vs. the f32 reference.
    y_ref = upblock_reference(x, weight, bias, gamma, beta, stride=stride)
    err = float(jnp.max(jnp.abs(y - y_ref)))
    assert err < 3e-2, f"max abs error {err}"

    print("KERNEL_OK")
</pallas_src>

<mosaic_0001>
module attributes {stable_mosaic.version = 11 : i64} {
  func.func @kernel(%arg0: i32, %arg1: memref<2x4x432xf32, #tpu.memory_space<vmem>>, %arg2: memref<16x24xf32, #tpu.memory_space<vmem>>, %arg3: memref<1x768xf32, #tpu.memory_space<vmem>>, %arg4: memref<8x1xf32, #tpu.memory_space<vmem>>, %arg5: memref<8x1xf32, #tpu.memory_space<vmem>>, %arg6: memref<16x768xf32, #tpu.memory_space<vmem>>, %arg7: memref<24x768xf32, #tpu.memory_space<vmem>>) attributes {dimension_semantics = [#tpu.dimension_semantics<arbitrary>], iteration_bounds = array<i64: 1>, scalar_prefetch = 0 : i64, scratch_operands = 1 : i64, tpu.core_type = #tpu.core_type<tc>, window_params = [{pipeline_mode = #tpu.pipeline_mode<synchronous>, transform_indices = @transform_0, window_bounds = array<i64: 2, 4, 432>}, {pipeline_mode = #tpu.pipeline_mode<synchronous>, transform_indices = @transform_1, window_bounds = array<i64: 16, 24>}, {pipeline_mode = #tpu.pipeline_mode<synchronous>, transform_indices = @transform_2, window_bounds = array<i64: 1, 768>}, {pipeline_mode = #tpu.pipeline_mode<synchronous>, transform_indices = @transform_3, window_bounds = array<i64: 8, 1>}, {pipeline_mode = #tpu.pipeline_mode<synchronous>, transform_indices = @transform_4, window_bounds = array<i64: 8, 1>}, {pipeline_mode = #tpu.pipeline_mode<synchronous>, transform_indices = @transform_5, window_bounds = array<i64: 16, 768>}]} {
    %c0 = arith.constant 0 : index
    %c0_0 = arith.constant 0 : index
    %c0_1 = arith.constant 0 : index
    %0 = vector.load %arg1[%c0, %c0_0, %c0_1] : memref<2x4x432xf32, #tpu.memory_space<vmem>>, vector<1x4x432xf32>
    %1 = vector.shape_cast %0 : vector<1x4x432xf32> to vector<4x432xf32>
    %2 = vector.extract_strided_slice %1 {offsets = [0, 0], sizes = [4, 384], strides = [1, 1]} : vector<4x432xf32> to vector<4x384xf32>
    %c0_2 = arith.constant 0 : index
    %c0_3 = arith.constant 0 : index
    %3 = vector.load %arg7[%c0_2, %c0_3] : memref<24x768xf32, #tpu.memory_space<vmem>>, vector<4x384xf32>
    tpu.vector_store %arg7[%c0_2, %c0_3], %2 {strides = array<i32>} : memref<24x768xf32, #tpu.memory_space<vmem>>, vector<4x384xf32>,
    %4 = vector.extract_strided_slice %1 {offsets = [0, 24], sizes = [4, 384], strides = [1, 1]} : vector<4x432xf32> to vector<4x384xf32>
    %c12 = arith.constant 12 : index
    %c0_4 = arith.constant 0 : index
    %5 = vector.load %arg7[%c12, %c0_4] : memref<24x768xf32, #tpu.memory_space<vmem>>, vector<4x384xf32>
    tpu.vector_store %arg7[%c12, %c0_4], %4 {strides = array<i32>} : memref<24x768xf32, #tpu.memory_space<vmem>>, vector<4x384xf32>,
    %6 = vector.extract_strided_slice %1 {offsets = [0, 1], sizes = [4, 384], strides = [1, 1]} : vector<4x432xf32> to vector<4x384xf32>
    %c4 = arith.constant 4 : index
    %c0_5 = arith.constant 0 : index
    %7 = vector.load %arg7[%c4, %c0_5] : memref<24x768xf32, #tpu.memory_space<vmem>>, vector<4x384xf32>
    tpu.vector_store %arg7[%c4, %c0_5], %6 {strides = array<i32>} : memref<24x768xf32, #tpu.memory_space<vmem>>, vector<4x384xf32>,
    %8 = vector.extract_strided_slice %1 {offsets = [0, 25], sizes = [4, 384], strides = [1, 1]} : vector<4x432xf32> to vector<4x384xf32>
    %c16 = arith.constant 16 : index
    %c0_6 = arith.constant 0 : index
    %9 = vector.load %arg7[%c16, %c0_6] : memref<24x768xf32, #tpu.memory_space<vmem>>, vector<4x384xf32>
    tpu.vector_store %arg7[%c16, %c0_6], %8 {strides = array<i32>} : memref<24x768xf32, #tpu.memory_space<vmem>>, vector<4x384xf32>,
    %10 = vector.extract_strided_slice %1 {offsets = [0, 2], sizes = [4, 384], strides = [1, 1]} : vector<4x432xf32> to vector<4x384xf32>
    %c8 = arith.constant 8 : index
    %c0_7 = arith.constant 0 : index
    %11 = vector.load %arg7[%c8, %c0_7] : memref<24x768xf32, #tpu.memory_space<vmem>>, vector<4x384xf32>
    tpu.vector_store %arg7[%c8, %c0_7], %10 {strides = array<i32>} : memref<24x768xf32, #tpu.memory_space<vmem>>, vector<4x384xf32>,
    %12 = vector.extract_strided_slice %1 {offsets = [0, 26], sizes = [4, 384], strides = [1, 1]} : vector<4x432xf32> to vector<4x384xf32>
    %c20 = arith.constant 20 : index
    %c0_8 = arith.constant 0 : index
    %13 = vector.load %arg7[%c20, %c0_8] : memref<24x768xf32, #tpu.memory_space<vmem>>, vector<4x384xf32>
    tpu.vector_store %arg7[%c20, %c0_8], %12 {strides = array<i32>} : memref<24x768xf32, #tpu.memory_space<vmem>>, vector<4x384xf32>,
    %c1 = arith.constant 1 : index
    %c0_9 = arith.constant 0 : index
    %c0_10 = arith.constant 0 : index
    %14 = vector.load %arg1[%c1, %c0_9, %c0_10] : memref<2x4x432xf32, #tpu.memory_space<vmem>>, vector<1x4x432xf32>
    %15 = vector.shape_cast %14 : vector<1x4x432xf32> to vector<4x432xf32>
    %16 = vector.extract_strided_slice %15 {offsets = [0, 0], sizes = [4, 384], strides = [1, 1]} : vector<4x432xf32> to vector<4x384xf32>
    %c0_11 = arith.constant 0 : index
    %c384 = arith.constant 384 : index
    %17 = vector.load %arg7[%c0_11, %c384] : memref<24x768xf32, #tpu.memory_space<vmem>>, vector<4x384xf32>
    tpu.vector_store %arg7[%c0_11, %c384], %16 {strides = array<i32>} : memref<24x768xf32, #tpu.memory_space<vmem>>, vector<4x384xf32>,
    %18 = vector.extract_strided_slice %15 {offsets = [0, 24], sizes = [4, 384], strides = [1, 1]} : vector<4x432xf32> to vector<4x384xf32>
    %c12_12 = arith.constant 12 : index
    %c384_13 = arith.constant 384 : index
    %19 = vector.load %arg7[%c12_12, %c384_13] : memref<24x768xf32, #tpu.memory_space<vmem>>, vector<4x384xf32>
    tpu.vector_store %arg7[%c12_12, %c384_13], %18 {strides = array<i32>} : memref<24x768xf32, #tpu.memory_space<vmem>>, vector<4x384xf32>,
    %20 = vector.extract_strided_slice %15 {offsets = [0, 1], sizes = [4, 384], strides = [1, 1]} : vector<4x432xf32> to vector<4x384xf32>
    %c4_14 = arith.constant 4 : index
    %c384_15 = arith.constant 384 : index
    %21 = vector.load %arg7[%c4_14, %c384_15] : memref<24x768xf32, #tpu.memory_space<vmem>>, vector<4x384xf32>
    tpu.vector_store %arg7[%c4_14, %c384_15], %20 {strides = array<i32>} : memref<24x768xf32, #tpu.memory_space<vmem>>, vector<4x384xf32>,
    %22 = vector.extract_strided_slice %15 {offsets = [0, 25], sizes = [4, 384], strides = [1, 1]} : vector<4x432xf32> to vector<4x384xf32>
    %c16_16 = arith.constant 16 : index
    %c384_17 = arith.constant 384 : index
    %23 = vector.load %arg7[%c16_16, %c384_17] : memref<24x768xf32, #tpu.memory_space<vmem>>, vector<4x384xf32>
    tpu.vector_store %arg7[%c16_16, %c384_17], %22 {strides = array<i32>} : memref<24x768xf32, #tpu.memory_space<vmem>>, vector<4x384xf32>,
    %24 = vector.extract_strided_slice %15 {offsets = [0, 2], sizes = [4, 384], strides = [1, 1]} : vector<4x432xf32> to vector<4x384xf32>
    %c8_18 = arith.constant 8 : index
    %c384_19 = arith.constant 384 : index
    %25 = vector.load %arg7[%c8_18, %c384_19] : memref<24x768xf32, #tpu.memory_space<vmem>>, vector<4x384xf32>
    tpu.vector_store %arg7[%c8_18, %c384_19], %24 {strides = array<i32>} : memref<24x768xf32, #tpu.memory_space<vmem>>, vector<4x384xf32>,
    %26 = vector.extract_strided_slice %15 {offsets = [0, 26], sizes = [4, 384], strides = [1, 1]} : vector<4x432xf32> to vector<4x384xf32>
    %c20_20 = arith.constant 20 : index
    %c384_21 = arith.constant 384 : index
    %27 = vector.load %arg7[%c20_20, %c384_21] : memref<24x768xf32, #tpu.memory_space<vmem>>, vector<4x384xf32>
    tpu.vector_store %arg7[%c20_20, %c384_21], %26 {strides = array<i32>} : memref<24x768xf32, #tpu.memory_space<vmem>>, vector<4x384xf32>,
    %c0_22 = arith.constant 0 : index
    %c0_23 = arith.constant 0 : index
    %28 = vector.load %arg2[%c0_22, %c0_23] : memref<16x24xf32, #tpu.memory_space<vmem>>, vector<16x24xf32>
    %c0_24 = arith.constant 0 : index
    %c0_25 = arith.constant 0 : index
    %29 = vector.load %arg7[%c0_24, %c0_25] : memref<24x768xf32, #tpu.memory_space<vmem>>, vector<24x768xf32>
    %cst = arith.constant dense<0.000000e+00> : vector<16x768xf32>
    %30 = tpu.matmul %28, %29, %cst {dimension_numbers = #tpu.dot_dimension_numbers<[1], [0], [0], [1], [0, 0, 1, 1], [], []>} : vector<16x24xf32>, vector<24x768xf32>, vector<16x768xf32> -> vector<16x768xf32>
    %c0_26 = arith.constant 0 : index
    %c0_27 = arith.constant 0 : index
    %31 = vector.load %arg3[%c0_26, %c0_27] : memref<1x768xf32, #tpu.memory_space<vmem>>, vector<1x768xf32>
    %32 = vector.broadcast %31 : vector<1x768xf32> to vector<16x768xf32>
    %33 = arith.mulf %30, %32 : vector<16x768xf32>
    %cst_28 = arith.constant dense<0.000000e+00> : vector<16xf32>
    %34 = vector.multi_reduction <add>, %33, %cst_28 [1] : vector<16x768xf32> to vector<16xf32>
    %35 = vector.shape_cast %34 : vector<16xf32> to vector<16x1xf32>
    %36 = arith.mulf %33, %30 : vector<16x768xf32>
    %cst_29 = arith.constant dense<0.000000e+00> : vector<16xf32>
    %37 = vector.multi_reduction <add>, %36, %cst_29 [1] : vector<16x768xf32> to vector<16xf32>
    %38 = vector.shape_cast %37 : vector<16xf32> to vector<16x1xf32>
    %39 = vector.extract_strided_slice %35 {offsets = [0, 0], sizes = [8, 1], strides = [1, 1]} : vector<16x1xf32> to vector<8x1xf32>
    %40 = vector.extract_strided_slice %35 {offsets = [8, 0], sizes = [8, 1], strides = [1, 1]} : vector<16x1xf32> to vector<8x1xf32>
    %41 = arith.addf %39, %40 : vector<8x1xf32>
    %42 = vector.extract_strided_slice %38 {offsets = [0, 0], sizes = [8, 1], strides = [1, 1]} : vector<16x1xf32> to vector<8x1xf32>
    %43 = vector.extract_strided_slice %38 {offsets = [8, 0], sizes = [8, 1], strides = [1, 1]} : vector<16x1xf32> to vector<8x1xf32>
    %44 = arith.addf %42, %43 : vector<8x1xf32>
    %cst_30 = arith.constant 8.68055562E-4 : f32
    %45 = vector.broadcast %cst_30 : f32 to vector<8x1xf32>
    %46 = arith.mulf %41, %45 : vector<8x1xf32>
    %cst_31 = arith.constant 8.68055562E-4 : f32
    %47 = vector.broadcast %cst_31 : f32 to vector<8x1xf32>
    %48 = arith.mulf %44, %47 : vector<8x1xf32>
    %49 = arith.mulf %46, %46 : vector<8x1xf32>
    %50 = arith.subf %48, %49 : vector<8x1xf32>
    %cst_32 = arith.constant 0.000000e+00 : f32
    %51 = vector.broadcast %cst_32 : f32 to vector<8x1xf32>
    %52 = arith.maximumf %50, %51 : vector<8x1xf32>
    %c0_33 = arith.constant 0 : index
    %c0_34 = arith.constant 0 : index
    %53 = vector.load %arg4[%c0_33, %c0_34] : memref<8x1xf32, #tpu.memory_space<vmem>>, vector<8x1xf32>
    %cst_35 = arith.constant 9.99999974E-6 : f32
    %54 = vector.broadcast %cst_35 : f32 to vector<8x1xf32>
    %55 = arith.addf %52, %54 : vector<8x1xf32>
    %56 = math.rsqrt %55 : vector<8x1xf32>
    %57 = arith.mulf %53, %56 : vector<8x1xf32>
    %c0_36 = arith.constant 0 : index
    %c0_37 = arith.constant 0 : index
    %58 = vector.load %arg5[%c0_36, %c0_37] : memref<8x1xf32, #tpu.memory_space<vmem>>, vector<8x1xf32>
    %59 = arith.mulf %46, %57 : vector<8x1xf32>
    %60 = arith.subf %58, %59 : vector<8x1xf32>
    %61 = tpu.concatenate %57, %57 in 0 : vector<8x1xf32>, vector<8x1xf32> -> vector<16x1xf32>
    %62 = tpu.concatenate %60, %60 in 0 : vector<8x1xf32>, vector<8x1xf32> -> vector<16x1xf32>
    %63 = vector.broadcast %61 : vector<16x1xf32> to vector<16x768xf32>
    %64 = arith.mulf %30, %63 : vector<16x768xf32>
    %65 = vector.broadcast %62 : vector<16x1xf32> to vector<16x768xf32>
    %66 = arith.addf %64, %65 : vector<16x768xf32>
    %cst_38 = arith.constant 0.000000e+00 : f32
    %67 = vector.broadcast %cst_38 : f32 to vector<16x768xf32>
    %68 = arith.maximumf %66, %67 : vector<16x768xf32>
    %c0_39 = arith.constant 0 : index
    %c0_40 = arith.constant 0 : index
    %69 = vector.load %arg6[%c0_39, %c0_40] : memref<16x768xf32, #tpu.memory_space<vmem>>, vector<16x768xf32>
    tpu.vector_store %arg6[%c0_39, %c0_40], %68 {strides = array<i32>} : memref<16x768xf32, #tpu.memory_space<vmem>>, vector<16x768xf32>,
    return
  }
  func.func @transform_0(%arg0: i32) -> (i32, i32, i32) {
    %c0_i32 = arith.constant 0 : i32
    %c0_i32_0 = arith.constant 0 : i32
    %c0_i32_1 = arith.constant 0 : i32
    %c0_i32_2 = arith.constant 0 : i32
    return %c0_i32, %c0_i32_0, %c0_i32_1 : i32, i32, i32
  }
  func.func @transform_1(%arg0: i32) -> (i32, i32) {
    %c0_i32 = arith.constant 0 : i32
    %c0_i32_0 = arith.constant 0 : i32
    %c0_i32_1 = arith.constant 0 : i32
    return %c0_i32, %c0_i32_0 : i32, i32
  }
  func.func @transform_2(%arg0: i32) -> (i32, i32) {
    %c0_i32 = arith.constant 0 : i32
    %c0_i32_0 = arith.constant 0 : i32
    %c0_i32_1 = arith.constant 0 : i32
    return %c0_i32, %c0_i32_0 : i32, i32
  }
  func.func @transform_3(%arg0: i32) -> (i32, i32) {
    %c0_i32 = arith.constant 0 : i32
    %c0_i32_0 = arith.constant 0 : i32
    %c0_i32_1 = arith.constant 0 : i32
    return %c0_i32, %c0_i32_0 : i32, i32
  }
  func.func @transform_4(%arg0: i32) -> (i32, i32) {
    %c0_i32 = arith.constant 0 : i32
    %c0_i32_0 = arith.constant 0 : i32
    %c0_i32_1 = arith.constant 0 : i32
    return %c0_i32, %c0_i32_0 : i32, i32
  }
  func.func @transform_5(%arg0: i32) -> (i32, i32) {
    %c0_i32 = arith.constant 0 : i32
    %c0_i32_0 = arith.constant 0 : i32
    %c0_i32_1 = arith.constant 0 : i32
    return %c0_i32, %c0_i32_0 : i32, i32
  }
}

</mosaic_0001>

<bundles_post_ra>
// kernel: upblock_forward.1
= control target key start
LH: loop header
LB: loop body
LE: loop exit
PB: predicated region body
PF: predicated region fallthrough
CT: control target
= control target key end

     0   :  { %s671_s24 = smov 103   ;;  %s672_s25 = smov 102   ;;  %v676_v12 = vmov 0.0   ;;  %vm112_vm0 = vcmask 834560   ;;  %vm76_vm1 = vcmask 842752   ;;  %vm39_vm2 = vcmask 850944   ;;  %s920_s0 = inlined_call_operand.vmem [shape: f32[2,4,432], index: 0, kind: input, shape index: {}]   ;;  %s921_s1 = inlined_call_operand.vmem [shape: f32[16,24], index: 1, kind: input, shape index: {}]   ;;  %s922_s2 = inlined_call_operand.vmem [shape: f32[1,768], index: 2, kind: input, shape index: {}]   ;;  %s923_s3 = inlined_call_operand.vmem [shape: f32[8,1], index: 3, kind: input, shape index: {}]   ;;  %s924_s4 = inlined_call_operand.vmem [shape: f32[8,1], index: 4, kind: input, shape index: {}]   ;;  %s925_s5 = inlined_call_operand.vmem [shape: f32[16,768], index: 5, kind: output, shape index: {}]  }
   0x1   :  { %v21_v0 = vld [vmem:[%s920_s0 + $0x8] sm:$0xff]  ;;  %v20_v1 = vld [vmem:[%s920_s0] sm:$0xff]  ;;  %v638_v2 = vld [vmem:[%s920_s0 + $0x10] sm:$0xff]  ;;  %s673_s28 = smov 104   ;;  %s674_s29 = smov 126   ;;  %311 = vmatprep.mubr.f32.mxu0 %v676_v12  ;;  %388 = vmatprep.mubr.f32.mxu1 %v676_v12  ;;  %vm94_vm3 = vcmask 1031168  }
   0x2   :  { %72 = vrot.lane.b32.xlu0 %v21_v0, %s671_s24  ;;  %28 = vst [vmem:[#allocation2 + $0x78] sm:$0xf] %v21_v0  ;;  %106 = vrot.lane.b32.xlu1 %v20_v1, %s672_s25  ;;  %26 = vst [vmem:[#allocation2] sm:$0xf] %v20_v1  ;;  %v30_v3 = vcombine.low %v21_v0, %v21_v0  ;;  %v24_v4 = vcombine.high %v20_v1, %v20_v1  ;;  %v639_v5 = vld [vmem:[%s920_s0 + $0x18] sm:$0xff]  ;;  %s675_s0 = smov 127  }
   0x3   :  { %129 = vst [vmem:[#allocation2 + $0x70] sm:$0xf] %v638_v2  ;;  %v127_v6 = vcombine.high %v638_v2, %v638_v2  ;;  %131 = vst [vmem:[#allocation2 + $0x40] sm:$0xf] %v639_v5  ;;  %v29_v7 = vcombine.low %v20_v1, %v20_v1  ;;  %v132_v8 = vcombine.low %v638_v2, %v638_v2  ;;  %vm57_vm4 = vcmask 1039360   ;;  %v788_v57 = vld [vmem:[%s921_s1] sm:$0xff] }
   0x4   :  { %27 = vst [vmem:[#allocation2 + $0x68] sm:$0xf] %v24_v4  ;;  %v67_v9 = vcombine.high %v21_v0, %v21_v0  ;;  %v168_v10 = vcombine.high %v639_v5, %v639_v5  ;;  %v133_v11 = vcombine.low %v639_v5, %v639_v5  ;;  %vm240_vm5 = vcmask 195584   ;;  %v797_v62 = vld [vmem:[%s921_s1 + $0x8] sm:$0xff] }
   0x5   :  { %130 = vst [vmem:[#allocation2 + $0x20] sm:$0xf] %v127_v6 }
   0x6   :  { %108 = vrot.lane.b32.xlu1 %v30_v3, %s672_s25  ;;  %70 = vrot.lane.b32.xlu0 %v24_v4, %s671_s24 }
   0xa   :  { %104 = vrot.lane.b32.xlu1 %v29_v7, %s672_s25  ;;  %68 = vrot.lane.b32.xlu0 %v20_v1, %s671_s24 }
   0xe   :  { %35 = vrot.lane.b32.xlu1 %v30_v3, %s673_s28  ;;  %33 = vrot.lane.b32.xlu0 %v20_v1, %s673_s28 }
  0x12   :  { %90 = vrot.lane.b32.xlu1 %v21_v0, %s674_s29  ;;  %88 = vrot.lane.b32.xlu0 %v24_v4, %s674_s29 }
  0x16   :  { %86 = vrot.lane.b32.xlu1 %v20_v1, %s674_s29  ;;  %31 = vrot.lane.b32.xlu0 %v29_v7, %s673_s28 }
  0x1a   :  { %53 = vrot.lane.b32.xlu1 %v30_v3, %s675_s0  ;;  %51 = vrot.lane.b32.xlu0 %v20_v1, %s675_s0 }
  0x1e   :  { %171 = vrot.lane.b32.xlu1 %v127_v6, %s671_s24  ;;  %169 = vrot.lane.b32.xlu0 %v638_v2, %s671_s24 }
  0x22   :  { %205 = vrot.lane.b32.xlu1 %v638_v2, %s672_s25  ;;  %203 = vrot.lane.b32.xlu0 %v132_v8, %s672_s25 }
  0x26   :  { %74 = vrot.lane.b32.xlu1 %v67_v9, %s671_s24  ;;  %49 = vrot.lane.b32.xlu0 %v29_v7, %s675_s0 }
  0x2a   :  { %134 = vrot.lane.b32.xlu1 %v132_v8, %s673_s28  ;;  %110 = vrot.lane.b32.xlu0 %v21_v0, %s672_s25 }
  0x2e   :  { %186 = vrot.lane.b32.xlu1 %v638_v2, %s674_s29  ;;  %136 = vrot.lane.b32.xlu0 %v638_v2, %s673_s28 }
  0x32   :  { %37 = vrot.lane.b32.xlu1 %v21_v0, %s673_s28  ;;  %188 = vrot.lane.b32.xlu0 %v127_v6, %s674_s29 }
  0x36   :  { %151 = vrot.lane.b32.xlu1 %v132_v8, %s675_s0  ;;  %92 = vrot.lane.b32.xlu0 %v67_v9, %s674_s29 }
  0x3a   :  { %55 = vrot.lane.b32.xlu1 %v21_v0, %s675_s0  ;;  %153 = vrot.lane.b32.xlu0 %v638_v2, %s675_s0 }
  0x3e   :  { %175 = vrot.lane.b32.xlu1 %v168_v10, %s671_s24  ;;  %173 = vrot.lane.b32.xlu0 %v639_v5, %s671_s24 }
  0x42   :  { %209 = vrot.lane.b32.xlu1 %v639_v5, %s672_s25  ;;  %207 = vrot.lane.b32.xlu0 %v133_v11, %s672_s25 }
  0x46   :  { %140 = vrot.lane.b32.xlu1 %v639_v5, %s673_s28  ;;  %138 = vrot.lane.b32.xlu0 %v133_v11, %s673_s28 }
  0x4a   :  { %192 = vrot.lane.b32.xlu1 %v168_v10, %s674_s29  ;;  %190 = vrot.lane.b32.xlu0 %v639_v5, %s674_s29 }
  0x4e   :  { %157 = vrot.lane.b32.xlu1 %v639_v5, %s675_s0  ;;  %155 = vrot.lane.b32.xlu0 %v133_v11, %s675_s0 }
  0x74   :  { %v73_v13 = vpop.permute.xlu0 %72  ;;  %v107_v14 = vpop.permute.xlu1 %106 }
  0x78   :  { %v109_v15 = vpop.permute.xlu1 %108  ;;  %v71_v16 = vpop.permute.xlu0 %70 }
  0x79   :  { %v114_v17 = vsel %vm112_vm0, %v107_v14, %v109_v15  ;;  %v78_v18 = vsel %vm76_vm1, %v71_v16, %v73_v13 }
  0x7a   :  { %120 = vst [vmem:[#allocation2 + $0x80] sm:$0xf0] %v114_v17  ;;  %84 = vst [vmem:[#allocation2 + $0x80] sm:$0xf] %v78_v18 }
  0x7c   :  { %v105_v19 = vpop.permute.xlu1 %104  ;;  %v69_v20 = vpop.permute.xlu0 %68 }
  0x7d   :  { %v113_v21 = vsel %vm112_vm0, %v105_v19, %v107_v14  ;;  %v77_v22 = vsel %vm76_vm1, %v69_v20, %v71_v16 }
  0x7e   :  { %119 = vst [vmem:[#allocation2 + $0x58] sm:$0xf0] %v113_v21  ;;  %83 = vst [vmem:[#allocation2 + $0x58] sm:$0xf] %v77_v22 }
  0x80   :  { %v766_v23 = vpop.permute.xlu1 %35  ;;  %v34_v24 = vpop.permute.xlu0 %33 }
  0x81   :  { %v41_v25 = vsel %vm39_vm2, %v34_v24, %v766_v23  ;;  %v235_v26 = vld [vmem:[#allocation2 + $0x80] sm:$0xff] }
  0x82   :  { %47 = vst [vmem:[#allocation2 + $0x38] sm:$0xf0] %v41_v25  ;;  %273 = vmatprep.subr.mxu0 %v235_v26 }
  0x84   :  { %v770_v27 = vpop.permute.xlu1 %90  ;;  %v89_v28 = vpop.permute.xlu0 %88 }
  0x85   :  { %v96_v29 = vsel %vm94_vm3, %v89_v28, %v770_v27  ;;  %v234_v30 = vld [vmem:[#allocation2 + $0x58] sm:$0xff] }
  0x86   :  { %102 = vst [vmem:[#allocation2 + $0x38] sm:$0xf] %v96_v29  ;;  %274 = vmatpush1.msra.mxu0 %v234_v30 }
  0x88   :  { %v87_v31 = vpop.permute.xlu1 %86  ;;  %v32_v32 = vpop.permute.xlu0 %31 }
  0x89   :  { %v95_v33 = vsel %vm94_vm3, %v87_v31, %v89_v28  ;;  %v40_v34 = vsel %vm39_vm2, %v32_v32, %v34_v24 }
  0x8a   :  { %101 = vst [vmem:[#allocation2 + $0x28] sm:$0xf] %v95_v33  ;;  %46 = vst [vmem:[#allocation2 + $0x28] sm:$0xf0] %v40_v34 }
  0x8c   :  { %v54_v35 = vpop.permute.xlu1 %53  ;;  %v52_v36 = vpop.permute.xlu0 %51 }
  0x8d   :  { %v59_v37 = vsel %vm57_vm4, %v52_v36, %v54_v35  ;;  %v229_v38 = vld [vmem:[#allocation2 + $0x38] sm:$0xff] }
  0x8e   :  { %65 = vst [vmem:[#allocation2 + $0x68] sm:$0xf0] %v59_v37  ;;  %275 = vmatprep.subr.mxu0 %v229_v38 }
  0x90   :  { %v172_v39 = vpop.permute.xlu1 %171  ;;  %v170_v40 = vpop.permute.xlu0 %169 }
  0x91   :  { %v177_v41 = vsel %vm76_vm1, %v170_v40, %v172_v39  ;;  %v228_v42 = vld [vmem:[#allocation2 + $0x28] sm:$0xff] }
  0x92   :  { %183 = vst [vmem:[#allocation2 + $0x30] sm:$0xf] %v177_v41  ;;  %276 = vmatpush1.msra.mxu0 %v228_v42 }
  0x94   :  { %v778_v43 = vpop.permute.xlu1 %205  ;;  %v204_v44 = vpop.permute.xlu0 %203 }
  0x95   :  { %v211_v45 = vsel %vm112_vm0, %v204_v44, %v778_v43  ;;  %v223_v46 = vld [vmem:[#allocation2 + $0x68] sm:$0xff] }
  0x96   :  { %217 = vst [vmem:[#allocation2 + $0x30] sm:$0xf0] %v211_v45  ;;  %277 = vmatprep.subr.mxu0 %v223_v46  ;;  %v478_v45 = vld [vmem:[%s922_s2] sm:$0x3f] }
  0x98   :  { %v75_v47 = vpop.permute.xlu1 %74  ;;  %v50_v48 = vpop.permute.xlu0 %49 }
  0x99   :  { %v79_v49 = vsel %vm76_vm1, %v73_v13, %v75_v47  ;;  %v58_v50 = vsel %vm57_vm4, %v50_v48, %v52_v36 }
  0x9a   :  { %85 = vst [vmem:[#allocation2 + $0x88] sm:$0xf] %v79_v49  ;;  %64 = vst [vmem:[#allocation2] sm:$0xf0] %v58_v50 }
  0x9c   :  { %v135_v51 = vpop.permute.xlu1 %134  ;;  %v111_v52 = vpop.permute.xlu0 %110 }
  0x9d   :  { %v115_v53 = vsel %vm112_vm0, %v109_v15, %v111_v52  ;;  %v237_v54 = vld [vmem:[#allocation2 + $0x30] sm:$0xff] }
  0x9e   :  { %121 = vst [vmem:[#allocation2 + $0x88] sm:$0xf0] %v115_v53  ;;  %350 = vmatprep.subr.mxu1 %v237_v54 }
  0xa0   :  { %v187_v55 = vpop.permute.xlu1 %186  ;;  %v137_v56 = vpop.permute.xlu0 %136 }
  0xa1   :  { %v142_v58 = vsel %vm39_vm2, %v135_v51, %v137_v56  ;;  %v222_v59 = vld [vmem:[#allocation2] sm:$0xff] }
  0xa2   :  { %148 = vst [vmem:[#allocation2 + $0x10] sm:$0xf0] %v142_v58  ;;  %278 = vmatpush1.msra.mxu0 %v222_v59 }
  0xa3   :  { %640 = vmatmul.mubr.msk.f32.vlgmr.msra.gmra.mxu0 %vm240_vm5, %v788_v57 }
  0xa4   :  { %v38_v60 = vpop.permute.xlu1 %37  ;;  %v189_v61 = vpop.permute.xlu0 %188  ;;  %317 = vmatprep.mubr.f32.mxu0 %v676_v12 }
  0xa5   :  { %v42_v63 = vsel %vm39_vm2, %v766_v23, %v38_v60  ;;  %v194_v0 = vsel %vm94_vm3, %v187_v55, %v189_v61  ;;  %v236_v1 = vld [vmem:[#allocation2 + $0x88] sm:$0xff] }
  0xa6   :  { %48 = vst [vmem:[#allocation2 + $0x8] sm:$0xf0] %v42_v63  ;;  %200 = vst [vmem:[#allocation2 + $0x10] sm:$0xf] %v194_v0  ;;  %351 = vmatpush1.msra.mxu1 %v236_v1 }
  0xa7   :  { %641 = vmatmul.mubr.msk.f32.gmra.mxu0 %vm240_vm5, %v797_v62 }
  0xa8   :  { %v152_v2 = vpop.permute.xlu1 %151  ;;  %v93_v3 = vpop.permute.xlu0 %92  ;;  %465 = vmatprep.mubr.f32.mxu0 %v676_v12 }
  0xa9   :  { %v97_v4 = vsel %vm94_vm3, %v770_v27, %v93_v3 }
  0xaa   :  { %103 = vst [vmem:[#allocation2 + $0x8] sm:$0xf] %v97_v4 }
  0xac   :  { %v56_v5 = vpop.permute.xlu1 %55  ;;  %v154_v6 = vpop.permute.xlu0 %153 }
  0xad   :  { %v60_v7 = vsel %vm57_vm4, %v54_v35, %v56_v5  ;;  %v159_v8 = vsel %vm57_vm4, %v152_v2, %v154_v6  ;;  %v231_v9 = vld [vmem:[#allocation2 + $0x10] sm:$0xff] }
  0xae   :  { %66 = vst [vmem:[#allocation2 + $0x78] sm:$0xf0] %v60_v7  ;;  %165 = vst [vmem:[#allocation2 + $0x70] sm:$0xf0] %v159_v8  ;;  %352 = vmatprep.subr.mxu1 %v231_v9 }
  0xb0   :  { %v176_v10 = vpop.permute.xlu1 %175  ;;  %v174_v11 = vpop.permute.xlu0 %173 }
  0xb1   :  { %v178_v13 = vsel %vm76_vm1, %v172_v39, %v174_v11  ;;  %v179_v14 = vsel %vm76_vm1, %v174_v11, %v176_v10  ;;  %v230_v15 = vld [vmem:[#allocation2 + $0x8] sm:$0xff]  ;;  %v480_v39 = vlaneseq }
  0xb2   :  { %184 = vst [vmem:[#allocation2 + $0x50] sm:$0xf] %v178_v13  ;;  %185 = vst [vmem:[#allocation2 + $0x48] sm:$0xf] %v179_v14  ;;  %353 = vmatpush1.msra.mxu1 %v230_v15 }
  0xb3   :  { %v481_v41 = vshrl.u32 %v480_v39, 7 }
  0xb4   :  { %v210_v16 = vpop.permute.xlu1 %209  ;;  %v208_v17 = vpop.permute.xlu0 %207 }
  0xb5   :  { %v212_v18 = vsel %vm112_vm0, %v778_v43, %v208_v17  ;;  %v213_v19 = vsel %vm112_vm0, %v208_v17, %v210_v16  ;;  %v225_v20 = vld [vmem:[#allocation2 + $0x70] sm:$0xff]  ;;  %v224_v21 = vld [vmem:[#allocation2 + $0x78] sm:$0xff]  ;;  %v482_v43 = vsub.s32 0, %v481_v41  ;;  %v486_v44 = vsub.s32 1, %v481_v41 }
  0xb6   :  { %218 = vst [vmem:[#allocation2 + $0x50] sm:$0xf0] %v212_v18  ;;  %219 = vst [vmem:[#allocation2 + $0x48] sm:$0xf0] %v213_v19  ;;  %354 = vmatprep.subr.mxu1 %v225_v20  ;;  %v490_v50 = vsub.s32 2, %v481_v41  ;;  %v494_v58 = vsub.s32 3, %v481_v41 }
  0xb7   :  { %355 = vmatpush1.msra.mxu1 %v224_v21  ;;  %v483_v48 = vrot.slane %v478_v45, %v482_v43  ;;  %v487_v49 = vrot.slane %v478_v45, %v486_v44  ;;  %v498_v5 = vsub.s32 4, %v481_v41  ;;  %v502_v8 = vsub.s32 5, %v481_v41 }
  0xb8   :  { %v141_v22 = vpop.permute.xlu1 %140  ;;  %v139_v23 = vpop.permute.xlu0 %138  ;;  %642 = vmatmul.mubr.msk.f32.vlgmr.msra.gmra.mxu1 %vm240_vm5, %v788_v57  ;;  %v495_v0 = vrot.slane %v478_v45, %v494_v58 }
  0xb9   :  { %v143_v24 = vsel %vm39_vm2, %v137_v56, %v139_v23  ;;  %v144_v25 = vsel %vm39_vm2, %v139_v23, %v141_v22  ;;  %394 = vmatprep.mubr.f32.mxu1 %v676_v12  ;;  %v491_v56 = vrot.slane %v478_v45, %v490_v50  ;;  %v499_v16 = vrot.slane %v478_v45, %v498_v5 }
  0xba   :  { %149 = vst [vmem:[#allocation2 + $0x18] sm:$0xf0] %v143_v24  ;;  %150 = vst [vmem:[#allocation2 + $0x60] sm:$0xf0] %v144_v25  ;;  %v503_v18 = vrot.slane %v478_v45, %v502_v8  ;;  %v677_v50 = vmov 0  }
  0xbb   :  { %659 = vset.pattern.permute.xlu1 %v677_v50  ;;  %660 = vset.pattern.permute.xlu0 %v677_v50 }
  0xbc   :  { %v193_v26 = vpop.permute.xlu1 %192  ;;  %v191_v27 = vpop.permute.xlu0 %190  ;;  %643 = vmatmul.mubr.msk.f32.gmra.mxu1 %vm240_vm5, %v797_v62 }
  0xbd   :  { %v195_v28 = vsel %vm94_vm3, %v189_v61, %v191_v27  ;;  %v196_v29 = vsel %vm94_vm3, %v191_v27, %v193_v26  ;;  %v239_v30 = vld [vmem:[#allocation2 + $0x48] sm:$0xff]  ;;  %v238_v31 = vld [vmem:[#allocation2 + $0x50] sm:$0xff]  ;;  %471 = vmatprep.mubr.f32.mxu1 %v676_v12 }
  0xbe   :  { %201 = vst [vmem:[#allocation2 + $0x18] sm:$0xf] %v195_v28  ;;  %202 = vst [vmem:[#allocation2 + $0x60] sm:$0xf] %v196_v29  ;;  %427 = vmatprep.subr.mxu0 %v239_v30  ;;  %646 = vmatprep.subr.mxu1 %v239_v30 }
  0xbf   :  { %428 = vmatpush1.msra.mxu0 %v238_v31  ;;  %649 = vmatpush1.msra.mxu1 %v238_v31 }
  0xc0   :  { %v158_v32 = vpop.permute.xlu1 %157  ;;  %v156_v33 = vpop.permute.xlu0 %155 }
  0xc1   :  { %v160_v34 = vsel %vm57_vm4, %v154_v6, %v156_v33  ;;  %v161_v35 = vsel %vm57_vm4, %v156_v33, %v158_v32 }
  0xc2   :  { %166 = vst [vmem:[#allocation2 + $0x20] sm:$0xf0] %v160_v34  ;;  %167 = vst [vmem:[#allocation2 + $0x40] sm:$0xf0] %v161_v35 }
  0xc5   :  { %v233_v36 = vld [vmem:[#allocation2 + $0x60] sm:$0xff]  ;;  %v232_v37 = vld [vmem:[#allocation2 + $0x18] sm:$0xff] }
  0xc6   :  { %429 = vmatprep.subr.mxu0 %v233_v36  ;;  %647 = vmatprep.subr.mxu1 %v233_v36 }
  0xc7   :  { %430 = vmatpush1.msra.mxu0 %v232_v37  ;;  %650 = vmatpush1.msra.mxu1 %v232_v37 }
  0xc9   :  { %v227_v12 = vld [vmem:[#allocation2 + $0x40] sm:$0xff] }
  0xca   :  { %v226_v38 = vld [vmem:[#allocation2 + $0x20] sm:$0xff]  ;;  %431 = vmatprep.subr.mxu0 %v227_v12  ;;  %648 = vmatprep.subr.mxu1 %v227_v12 }
  0xcb   :  { %432 = vmatpush1.msra.mxu0 %v226_v38  ;;  %651 = vmatpush1.msra.mxu1 %v226_v38 }
  0xcc   :  { %644 = vmatmul.mubr.msk.f32.vlgmr.msra.gmra.mxu0 %vm240_vm5, %v788_v57  ;;  %645 = vmatmul.mubr.msk.f32.vlgmr.msra.gmra.mxu1 %vm240_vm5, %v797_v62 }
 0x163   :  { %v830_v40 = vpop.f32.mrf.mxu0 }
 0x164   :  { %v510_v53 = vmul.f32 %v483_v48, %v830_v40 }
 0x165   :  { %v832_v42 = vpop.f32.mrf.mxu0 }
 0x166   :  { %v511_v54 = vmul.f32 %v487_v49, %v832_v42  ;;  %v536_v60 = vmul.f32 %v510_v53, %v830_v40 }
 0x167   :  { %v837_v46 = vpop.f32.mrf.mxu0 }
 0x168   :  { %v516_v55 = vmul.f32 %v483_v48, %v837_v46  ;;  %v537_v61 = vmul.f32 %v511_v54, %v832_v42  ;;  %v522_v6 = vadd.f32 %v511_v54, %v510_v53 }
 0x169   :  { %v841_v51 = vpop.f32.mrf.mxu0 }
 0x16a   :  { %v517_v57 = vmul.f32 %v487_v49, %v841_v51  ;;  %v542_v2 = vmul.f32 %v516_v55, %v837_v46  ;;  %v548_v7 = vadd.f32 %v537_v61, %v536_v60 }
 0x16c   :  { %v529_v63 = vadd.f32 %v517_v57, %v516_v55  ;;  %v543_v3 = vmul.f32 %v517_v57, %v841_v51 }
 0x16e   :  { %v555_v14 = vadd.f32 %v543_v3, %v542_v2  ;;  %v569_v2 = vld [vmem:[%s923_s3] sm:$0xff] }
 0x178   :  { %v839_v47 = vpop.f32.mrf.mxu1 }
 0x179   :  { %v512_v62 = vmul.f32 %v491_v56, %v839_v47 }
 0x17a   :  { %v843_v52 = vpop.f32.mrf.mxu1 }
 0x17b   :  { %v538_v9 = vmul.f32 %v512_v62, %v839_v47  ;;  %v513_v10 = vmul.f32 %v495_v0, %v843_v52  ;;  %v523_v17 = vadd.f32 %v522_v6, %v512_v62  ;;  %v573_v6 = vld [vmem:[%s924_s4] sm:$0xff] }
 0x17c   :  { %v849_v59 = vpop.f32.mrf.mxu1 }
 0x17d   :  { %v518_v1 = vmul.f32 %v491_v56, %v849_v59  ;;  %v549_v19 = vadd.f32 %v548_v7, %v538_v9  ;;  %v539_v20 = vmul.f32 %v513_v10, %v843_v52  ;;  %v524_v30 = vadd.f32 %v523_v17, %v513_v10 }
 0x17e   :  { %v857_v4 = vpop.f32.mrf.mxu1 }
 0x17f   :  { %v530_v11 = vadd.f32 %v529_v63, %v518_v1  ;;  %v519_v13 = vmul.f32 %v495_v0, %v857_v4  ;;  %v544_v15 = vmul.f32 %v518_v1, %v849_v59  ;;  %v550_v36 = vadd.f32 %v549_v19, %v539_v20 }
 0x181   :  { %v531_v23 = vadd.f32 %v530_v11, %v519_v13  ;;  %v556_v24 = vadd.f32 %v555_v14, %v544_v15  ;;  %v545_v25 = vmul.f32 %v519_v13, %v857_v4 }
 0x183   :  { %v557_v12 = vadd.f32 %v556_v24, %v545_v25 }
 0x18c   :  { %v467_v21 = vpop.f32.mrf.mxu0  ;;  %v864_v22 = vpop.f32.mrf.mxu1 }
 0x18d   :  { %v514_v26 = vmul.f32 %v499_v16, %v467_v21  ;;  %v520_v27 = vmul.f32 %v499_v16, %v864_v22 }
 0x18e   :  { %v469_v28 = vpop.f32.mrf.mxu0  ;;  %v475_v29 = vpop.f32.mrf.mxu1 }
 0x18f   :  { %v540_v31 = vmul.f32 %v514_v26, %v467_v21  ;;  %v515_v32 = vmul.f32 %v503_v18, %v469_v28  ;;  %v521_v33 = vmul.f32 %v503_v18, %v475_v29  ;;  %v532_v34 = vadd.f32 %v531_v23, %v520_v27 }
 0x190   :  { %v525_v35 = vadd.f32 %v524_v30, %v514_v26  ;;  %v546_v37 = vmul.f32 %v520_v27, %v864_v22 }
 0x191   :  { %v541_v38 = vmul.f32 %v515_v32, %v469_v28  ;;  %v533_v39 = vadd.f32 %v532_v34, %v521_v33  ;;  %v551_v43 = vadd.f32 %v550_v36, %v540_v31  ;;  %v547_v44 = vmul.f32 %v521_v33, %v475_v29 }
 0x192   :  { %v526_v41 = vadd.f32 %v525_v35, %v515_v32  ;;  %v558_v48 = vadd.f32 %v557_v12, %v546_v37 }
 0x193   :  { %534 = vadd.xlane.f32.xlu1 %v533_v39  ;;  %v552_v45 = vadd.f32 %v551_v43, %v541_v38 }
 0x194   :  { %527 = vadd.xlane.f32.xlu0 %v526_v41  ;;  %v559_v49 = vadd.f32 %v558_v48, %v547_v44 }
 0x198   :  { %553 = vadd.xlane.f32.xlu0 %v552_v45 }
 0x19c   :  { %560 = vadd.xlane.f32.xlu0 %v559_v49 }
 0x21c   :  { %v535_v53 = vpop.xlane.xlu1 %534 }
 0x21d   :  { %v528_v54 = vpop.xlane.xlu0 %527 }
 0x21e   :  { %v562_v55 = vadd.f32 %v535_v53, %v528_v54 }
 0x220   :  { %v564_v57 = vmul.f32 0.00086805556, %v562_v55 }
 0x221   :  { %v554_v56 = vpop.xlane.xlu0 %553 }
 0x222   :  { %v566_v61 = vmul.f32 %v564_v57, %v564_v57 }
 0x225   :  { %v561_v58 = vpop.xlane.xlu0 %560 }
 0x226   :  { %v563_v60 = vadd.f32 %v561_v58, %v554_v56 }
 0x228   :  { %v565_v62 = vmul.f32 0.00086805556, %v563_v60 }
 0x22a   :  { %v567_v63 = vsub.f32 %v565_v62, %v566_v61 }
 0x22c   :  { %v568_v0 = vmax.f32 %v567_v63, 0.0 }
 0x22e   :  { %v570_v1 = vadd.f32 1e-05, %v568_v0 }
 0x230   :  { %669 = vrsqrt.f32 %v570_v1 }
 0x23d   :  { %v670_v3 = vpop.eup %669 }
 0x23e   :  { %v572_v5 = vmul.f32 %v670_v3, %v569_v2 }
 0x240   :  { %578 = vperm.xlu1 %659, %v572_v5   ;;  %v574_v7 = vmul.f32 %v572_v5, %v564_v57 }
 0x242   :  { %v575_v8 = vsub.f32 %v573_v6, %v574_v7 }
 0x244   :  { %595 = vperm.xlu0 %660, %v575_v8  }
 0x2bb   :  { %v579_v9 = vpop.permute.xlu1 %578 }
 0x2bc   :  { %v581_v10 = vmul.f32 %v579_v9, %v830_v40  ;;  %v582_v11 = vmul.f32 %v579_v9, %v832_v42  ;;  %v583_v13 = vmul.f32 %v579_v9, %v839_v47  ;;  %v584_v14 = vmul.f32 %v579_v9, %v843_v52 }
 0x2bd   :  { %v585_v15 = vmul.f32 %v579_v9, %v467_v21  ;;  %v586_v16 = vmul.f32 %v579_v9, %v469_v28  ;;  %v587_v17 = vmul.f32 %v579_v9, %v837_v46  ;;  %v588_v18 = vmul.f32 %v579_v9, %v841_v51 }
 0x2be   :  { %v589_v19 = vmul.f32 %v579_v9, %v849_v59  ;;  %v590_v20 = vmul.f32 %v579_v9, %v857_v4  ;;  %v591_v23 = vmul.f32 %v579_v9, %v864_v22  ;;  %v592_v24 = vmul.f32 %v579_v9, %v475_v29 }
 0x2bf   :  { %v596_v40 = vpop.permute.xlu0 %595 }
 0x2c0   :  { %v598_v25 = vadd.f32 %v596_v40, %v581_v10  ;;  %v599_v42 = vadd.f32 %v596_v40, %v582_v11  ;;  %v600_v26 = vadd.f32 %v596_v40, %v583_v13  ;;  %v601_v47 = vadd.f32 %v596_v40, %v584_v14 }
 0x2c1   :  { %v602_v27 = vadd.f32 %v596_v40, %v585_v15  ;;  %v603_v52 = vadd.f32 %v596_v40, %v586_v16  ;;  %v604_v21 = vadd.f32 %v596_v40, %v587_v17  ;;  %v605_v28 = vadd.f32 %v596_v40, %v588_v18 }
 0x2c2   :  { %v606_v30 = vadd.f32 %v596_v40, %v589_v19  ;;  %v607_v46 = vadd.f32 %v596_v40, %v590_v20  ;;  %v608_v31 = vadd.f32 %v596_v40, %v591_v23  ;;  %v609_v51 = vadd.f32 %v596_v40, %v592_v24 }
 0x2c3   :  { %v610_v32 = vmax.f32 %v598_v25, 0.0  ;;  %v611_v59 = vmax.f32 %v599_v42, 0.0  ;;  %v612_v33 = vmax.f32 %v600_v26, 0.0  ;;  %v613_v4 = vmax.f32 %v601_v47, 0.0 }
 0x2c4   :  { %v614_v34 = vmax.f32 %v602_v27, 0.0  ;;  %v615_v22 = vmax.f32 %v603_v52, 0.0  ;;  %v616_v29 = vmax.f32 %v604_v21, 0.0  ;;  %v617_v35 = vmax.f32 %v605_v28, 0.0 }
 0x2c5   :  { %v618_v36 = vmax.f32 %v606_v30, 0.0  ;;  %v619_v37 = vmax.f32 %v607_v46, 0.0  ;;  %v620_v12 = vmax.f32 %v608_v31, 0.0  ;;  %v621_v38 = vmax.f32 %v609_v51, 0.0  ;;  %622 = vst [vmem:[%s925_s5] sm:$0xff] %v610_v32  ;;  %623 = vst [vmem:[%s925_s5 + $0x8] sm:$0xff] %v611_v59 }
 0x2c6   :  { %624 = vst [vmem:[%s925_s5 + $0x10] sm:$0xff] %v612_v33  ;;  %625 = vst [vmem:[%s925_s5 + $0x18] sm:$0xff] %v613_v4 }
 0x2c7   :  { %626 = vst [vmem:[%s925_s5 + $0x20] sm:$0xff] %v614_v34  ;;  %627 = vst [vmem:[%s925_s5 + $0x28] sm:$0xff] %v615_v22 }
 0x2c8   :  { %628 = vst [vmem:[%s925_s5 + $0x30] sm:$0xff] %v616_v29  ;;  %629 = vst [vmem:[%s925_s5 + $0x38] sm:$0xff] %v617_v35 }
 0x2c9   :  { %630 = vst [vmem:[%s925_s5 + $0x40] sm:$0xff] %v618_v36  ;;  %631 = vst [vmem:[%s925_s5 + $0x48] sm:$0xff] %v619_v37 }
 0x2ca   :  { %632 = vst [vmem:[%s925_s5 + $0x50] sm:$0xff] %v620_v12  ;;  %633 = vst [vmem:[%s925_s5 + $0x58] sm:$0xff] %v621_v38 }

</bundles_post_ra>
